<compile_context>
chip_gen: v6e
topology: v6e:2x2x1
jax: 0.10.0
libtpu: 0.0.40
codegen_flags: <defaults>
</compile_context>

<pallas_src>
import jax
import jax.numpy as jnp
from jax.experimental import pallas as pl
from jax.experimental.pallas import tpu as pltpu


_FAST_PATH_BYTES = 4 * 1024 * 1024     # below this, a fused XLA tile beats any kernel
_IN_TILE_TARGET = 8 * 1024 * 1024      # max input row-tile kept resident in VMEM
_MAX_DMAS_PER_STEP = 16                # repeats written (DMAs in flight) per grid step


def _make_repeat_dma_kernel(n_reps: int, k: int, rows: int, tile_rows: int):
    """Kernel: the (tile_rows, 128) input row-tile is auto-pipelined into VMEM by
    BlockSpec (block index constant along the repeat axis -> one HBM read per
    row-tile, stays resident).  The body issues k direct VMEM->HBM DMAs of that
    tile, one per repeat of this group, then drains them so the pipelined input
    buffer can be safely reused by the next row-tile."""
    guard_tail = (n_reps % k) != 0

    def kernel(x_ref, o_ref, sems):
        r = pl.program_id(0)          # row-tile index
        g = pl.program_id(1)          # repeat-group index
        row0 = r * tile_rows
        base = g * k

        def dst(rep):
            # Output is a flat lane-dense (n*rows, 128) HBM buffer; repeat `rep`
            # occupies rows [rep*rows, (rep+1)*rows) -> fully contiguous DMA target.
            return o_ref.at[pl.ds(rep * rows + row0, tile_rows), :]

        # Issue all k output DMAs (they overlap on the DMA engines)...
        for j in range(k):
            rep = base + j
            if guard_tail:
                @pl.when(rep < n_reps)
                def _(rep=rep, j=j):
                    pltpu.make_async_copy(x_ref, dst(rep), sems.at[j]).start()
            else:
                pltpu.make_async_copy(x_ref, dst(rep), sems.at[j]).start()

        # ...then wait for all of them before the grid step ends.
        for j in range(k):
            rep = base + j
            if guard_tail:
                @pl.when(rep < n_reps)
                def _(rep=rep, j=j):
                    pltpu.make_async_copy(x_ref, dst(rep), sems.at[j]).wait()
            else:
                pltpu.make_async_copy(x_ref, dst(rep), sems.at[j]).wait()

    return kernel


def _largest_aligned_divisor(x: int, cap: int, align: int):
    """Largest d <= cap with x % d == 0 and d % align == 0, or None."""
    cap = min(cap, x)
    start = cap - (cap % align)
    for d in range(start, 0, -align):
        if x % d == 0:
            return d
    return None


def _vmem_limit_bytes(vmem_need: int) -> int:
    # Cap safely below the smallest physical VMEM (v7x: 64 MiB physical).
    try:
        cap = int(pltpu.get_tpu_info().vmem_capacity_bytes) * 3 // 4
    except Exception:
        cap = 48 << 20
    cap = min(cap, 48 << 20)
    return int(min(max(vmem_need, 16 << 20), cap))


def repeat_pallas(x: jax.Array, n: int, *, min_pallas_bytes: int = _FAST_PATH_BYTES) -> jax.Array:
    """Equivalent of torch.Tensor.repeat(n, 1) for 1D or 2D inputs."""
    if n < 1:
        raise ValueError("n must be >= 1")
    if x.ndim == 1:
        x = x[None, :]                       # torch .repeat prepends unit dims
    if x.ndim != 2:
        raise ValueError("Repeat(n) supports 1D/2D tensors (matches .repeat(n, 1))")

    R, C = x.shape
    itemsize = jnp.dtype(x.dtype).itemsize
    flat = R * C
    out_bytes = n * flat * itemsize

    # Small outputs (launch/grid overhead dominates) and non-lane-dense flat sizes
    # (masked vst / pad+strided-slice both cost more than they save) go through the
    # fused XLA broadcast.
    if out_bytes < min_pallas_bytes or flat == 0 or flat % 128 != 0:
        return jnp.tile(x, (n, 1))

    # Lane-dense flat view: the repeated output's flat buffer is n concatenated
    # copies of flat(x), so we can copy any bitwise-identical 2-D view.  (rows, 128)
    # makes every DMA line a full, unmasked 128-lane row.
    rows, cols = flat // 128, 128
    x2 = x.reshape(rows, cols)               # contiguous row-major -> bitcast

    sublane_min = max(8, 32 // itemsize)     # 8 f32 / 16 bf16 / 32 int8
    row_bytes = cols * itemsize
    cap_rows = max(sublane_min, _IN_TILE_TARGET // row_bytes)

    if rows <= cap_rows:
        tile_rows = rows                     # whole slab resident (full-extent block)
    else:
        tile_rows = _largest_aligned_divisor(rows, cap_rows, sublane_min)
        if tile_rows is None:
            # Pathological row count with no sublane-aligned tiling of an
            # over-VMEM slab: never over-allocate VMEM, degrade to XLA.
            return jnp.tile(x, (n, 1))
    num_row_tiles = rows // tile_rows
    tile_bytes = tile_rows * row_bytes

    # Repeats per grid step (= DMAs in flight per step).  Keep >=2 repeat groups
    # so v7x can shard the parallel axis across both TensorCores, and softly aim
    # for >=4 total grid steps without shrinking per-step DMA batches below
    # ~512 KiB.  No k | n requirement: the tail group uses predicated DMAs.
    k = min(n, _MAX_DMAS_PER_STEP)
    if n >= 2:
        k = min(k, (n + 1) // 2)
    while (k > 1
           and num_row_tiles * ((n + k - 1) // k) < 4
           and (k // 2) * tile_bytes >= 512 * 1024):
        k //= 2
    num_groups = (n + k - 1) // k
    grid = (num_row_tiles, num_groups)

    # Only the (double-buffered) input row-tile lives in VMEM; output bypasses
    # VMEM entirely via direct DMAs.
    vmem_limit = _vmem_limit_bytes(2 * tile_bytes + (2 << 20))

    kernel = _make_repeat_dma_kernel(n, k, rows, tile_rows)

    out2 = pl.pallas_call(
        kernel,
        out_shape=jax.ShapeDtypeStruct((n * rows, cols), x.dtype),
        grid=grid,
        # Input row-tile: block index constant along the innermost (repeat) axis,
        # so it is fetched from HBM once per row-tile and stays resident in VMEM.
        in_specs=[pl.BlockSpec((tile_rows, cols), lambda r, g: (r, 0))],
        # Output: raw HBM ref, written only by the kernel's manual DMAs.
        out_specs=pl.BlockSpec(memory_space=pl.ANY),
        scratch_shapes=[pltpu.SemaphoreType.DMA((k,))],
        compiler_params=pltpu.CompilerParams(
            dimension_semantics=("parallel", "parallel"),
            vmem_limit_bytes=vmem_limit,
        ),
        cost_estimate=pl.CostEstimate(
            flops=0,
            transcendentals=0,
            bytes_accessed=(1 + n) * flat * itemsize,
        ),
    )(x2)

    # (n*rows, 128) and (n*R, C) share the same contiguous row-major flat order,
    # so this reshape is a bitcast (no relayout copy).
    return out2.reshape(n * R, C)


class Repeat:
    """Drop-in analogue of the PyTorch module."""

    def __init__(self, n: int):
        self.n = n

    def __call__(self, tensor: jax.Array) -> jax.Array:
        return repeat_pallas(tensor, self.n)


if __name__ == "__main__":
    key = jax.random.PRNGKey(0)
    k2d, k1d, kcif = jax.random.split(key, 3)
    n = 4

    # 2D case [8, 32] -> [32, 32], forced through the Pallas DMA path.
    x2d = jax.random.normal(k2d, (8, 32), dtype=jnp.float32)
    y2d = jax.block_until_ready(repeat_pallas(x2d, n, min_pallas_bytes=0))
    assert y2d.shape == (n * 8, 32) and y2d.dtype == x2d.dtype
    assert jnp.array_equal(y2d, jnp.tile(x2d, (n, 1)))

    # 1D case [128] -> [4, 128], forced through the Pallas DMA path.
    x1d = jax.random.normal(k1d, (128,), dtype=jnp.float32)
    y1d = jax.block_until_ready(repeat_pallas(x1d, n, min_pallas_bytes=0))
    assert y1d.shape == (n, 128)
    assert jnp.array_equal(y1d, jnp.tile(x1d[None, :], (n, 1)))

    # CIFAR-style SNN use: flattened [3*32*32] sample over 96 timesteps
    # (lane-dense slab, multiple repeat groups) forced onto the Pallas path.
    xc = jax.random.normal(kcif, (3 * 32 * 32,), dtype=jnp.float32)
    yc = jax.block_until_ready(repeat_pallas(xc, 96, min_pallas_bytes=0))
    assert yc.shape == (96, 3 * 32 * 32)
    assert jnp.array_equal(yc, jnp.tile(xc[None, :], (96, 1)))

    # Awkward repeat count (prime n -> n % k != 0 -> predicated tail DMAs).
    y97 = jax.block_until_ready(repeat_pallas(xc, 97, min_pallas_bytes=0))
    assert y97.shape == (97, 3 * 32 * 32)
    assert jnp.array_equal(y97, jnp.tile(xc[None, :], (97, 1)))

    # Non-lane-dense flat size and tiny default-threshold inputs: fused XLA path.
    xf = jax.random.normal(k2d, (8, 100), dtype=jnp.float32)
    assert jnp.array_equal(repeat_pallas(xf, n, min_pallas_bytes=0), jnp.tile(xf, (n, 1)))
    assert jnp.array_equal(repeat_pallas(x2d, n), jnp.tile(x2d, (n, 1)))

    # Module-style wrapper mirroring the PyTorch class.
    yr = jax.block_until_ready(Repeat(96)(xc))
    assert jnp.array_equal(yr, jnp.tile(xc[None, :], (96, 1)))

    print("KERNEL_OK")
</pallas_src>

<mosaic_0001>
module attributes {stable_mosaic.version = 11 : i64} {
  func.func @kernel(%arg0: i32, %arg1: i32, %arg2: memref<2x128xf32, #tpu.memory_space<vmem>>, %arg3: memref<8x128xf32, #tpu.memory_space<any>>, %arg4: memref<2x!tpu.dma_semaphore, #tpu.memory_space<semaphore_mem>>) attributes {dimension_semantics = [#tpu.dimension_semantics<parallel>, #tpu.dimension_semantics<parallel>], iteration_bounds = array<i64: 1, 2>, scalar_prefetch = 0 : i64, scratch_operands = 1 : i64, tpu.core_type = #tpu.core_type<tc>, window_params = [{transform_indices = @transform_0, window_bounds = array<i64: 2, 128>}, {}]} {
    %c2_i32 = arith.constant 2 : i32
    %0 = arith.muli %arg0, %c2_i32 : i32
    %c2_i32_0 = arith.constant 2 : i32
    %1 = arith.muli %arg1, %c2_i32_0 : i32
    %c0_i32 = arith.constant 0 : i32
    %2 = arith.addi %1, %c0_i32 : i32
    %c2_i32_1 = arith.constant 2 : i32
    %3 = arith.muli %2, %c2_i32_1 : i32
    %4 = arith.addi %3, %0 : i32
    %c0_i32_2 = arith.constant 0 : i32
    %c0_i32_3 = arith.constant 0 : i32
    %5 = tpu.memref_slice %arg3[%4, %c0_i32_3] : memref<8x128xf32, #tpu.memory_space<any>> -> memref<2x128xf32, #tpu.memory_space<any>>
    %6 = tpu.memref_slice %arg4[%c0_i32_2] : memref<2x!tpu.dma_semaphore, #tpu.memory_space<semaphore_mem>> -> memref<1x!tpu.dma_semaphore, #tpu.memory_space<semaphore_mem>>
    %7 = tpu.memref_squeeze %6 : memref<1x!tpu.dma_semaphore, #tpu.memory_space<semaphore_mem>> -> memref<!tpu.dma_semaphore, #tpu.memory_space<semaphore_mem>>
    tpu.enqueue_dma source(%arg2 : memref<2x128xf32, #tpu.memory_space<vmem>>) target(%5 : memref<2x128xf32, #tpu.memory_space<any>>) target_semaphore(%7 : memref<!tpu.dma_semaphore, #tpu.memory_space<semaphore_mem>>)
    %c1_i32 = arith.constant 1 : i32
    %8 = arith.addi %1, %c1_i32 : i32
    %c2_i32_4 = arith.constant 2 : i32
    %9 = arith.muli %8, %c2_i32_4 : i32
    %10 = arith.addi %9, %0 : i32
    %c1_i32_5 = arith.constant 1 : i32
    %c0_i32_6 = arith.constant 0 : i32
    %11 = tpu.memref_slice %arg3[%10, %c0_i32_6] : memref<8x128xf32, #tpu.memory_space<any>> -> memref<2x128xf32, #tpu.memory_space<any>>
    %12 = tpu.memref_slice %arg4[%c1_i32_5] : memref<2x!tpu.dma_semaphore, #tpu.memory_space<semaphore_mem>> -> memref<1x!tpu.dma_semaphore, #tpu.memory_space<semaphore_mem>>
    %13 = tpu.memref_squeeze %12 : memref<1x!tpu.dma_semaphore, #tpu.memory_space<semaphore_mem>> -> memref<!tpu.dma_semaphore, #tpu.memory_space<semaphore_mem>>
    tpu.enqueue_dma source(%arg2 : memref<2x128xf32, #tpu.memory_space<vmem>>) target(%11 : memref<2x128xf32, #tpu.memory_space<any>>) target_semaphore(%13 : memref<!tpu.dma_semaphore, #tpu.memory_space<semaphore_mem>>)
    %c0_i32_7 = arith.constant 0 : i32
    %14 = arith.addi %1, %c0_i32_7 : i32
    %c2_i32_8 = arith.constant 2 : i32
    %15 = arith.muli %14, %c2_i32_8 : i32
    %16 = arith.addi %15, %0 : i32
    %c0_i32_9 = arith.constant 0 : i32
    %c0_i32_10 = arith.constant 0 : i32
    %17 = tpu.memref_slice %arg3[%16, %c0_i32_10] : memref<8x128xf32, #tpu.memory_space<any>> -> memref<2x128xf32, #tpu.memory_space<any>>
    %18 = tpu.memref_slice %arg4[%c0_i32_9] : memref<2x!tpu.dma_semaphore, #tpu.memory_space<semaphore_mem>> -> memref<1x!tpu.dma_semaphore, #tpu.memory_space<semaphore_mem>>
    %19 = tpu.memref_squeeze %18 : memref<1x!tpu.dma_semaphore, #tpu.memory_space<semaphore_mem>> -> memref<!tpu.dma_semaphore, #tpu.memory_space<semaphore_mem>>
    tpu.wait_dma2 semaphore(%19 : memref<!tpu.dma_semaphore, #tpu.memory_space<semaphore_mem>>) src(%arg2 : memref<2x128xf32, #tpu.memory_space<vmem>>) dst(%17 : memref<2x128xf32, #tpu.memory_space<any>>)
    %c1_i32_11 = arith.constant 1 : i32
    %20 = arith.addi %1, %c1_i32_11 : i32
    %c2_i32_12 = arith.constant 2 : i32
    %21 = arith.muli %20, %c2_i32_12 : i32
    %22 = arith.addi %21, %0 : i32
    %c1_i32_13 = arith.constant 1 : i32
    %c0_i32_14 = arith.constant 0 : i32
    %23 = tpu.memref_slice %arg3[%22, %c0_i32_14] : memref<8x128xf32, #tpu.memory_space<any>> -> memref<2x128xf32, #tpu.memory_space<any>>
    %24 = tpu.memref_slice %arg4[%c1_i32_13] : memref<2x!tpu.dma_semaphore, #tpu.memory_space<semaphore_mem>> -> memref<1x!tpu.dma_semaphore, #tpu.memory_space<semaphore_mem>>
    %25 = tpu.memref_squeeze %24 : memref<1x!tpu.dma_semaphore, #tpu.memory_space<semaphore_mem>> -> memref<!tpu.dma_semaphore, #tpu.memory_space<semaphore_mem>>
    tpu.wait_dma2 semaphore(%25 : memref<!tpu.dma_semaphore, #tpu.memory_space<semaphore_mem>>) src(%arg2 : memref<2x128xf32, #tpu.memory_space<vmem>>) dst(%23 : memref<2x128xf32, #tpu.memory_space<any>>)
    return
  }
  func.func @transform_0(%arg0: i32, %arg1: i32) -> (i32, i32) {
    %c0_i32 = arith.constant 0 : i32
    %c0_i32_0 = arith.constant 0 : i32
    return %arg0, %c0_i32 : i32, i32
  }
}

</mosaic_0001>

<bundles_post_ra>
// kernel: tpu_custom_call.1
= control target key start
LH: loop header
LB: loop body
LE: loop exit
PB: predicated region body
PF: predicated region fallthrough
CT: control target
= control target key end

     0   :  { %6 = vsyncpa [#allocation4], 0  ;;  %s357_s6 = smov 0   ;;  %s359_s7 = smov 0   ;;  %s440_s0 = inlined_call_operand.hbm [shape: f32[2,128], index: 0, kind: input, shape index: {}]   ;;  %s441_s1 = inlined_call_operand.hbm [shape: f32[8,128], index: 1, kind: output, shape index: {}]  }
   0x1   :  { %s361_s8 = smov 0  }
   0x2 LB: > { %s169_s9 = sadd.s32 4294967295, %s344_s8   ;;  %s18_s10 = sadd.s32 1, %s340_s7  ;;  %s344_s8 = sphi %s361_s8, %s12_s8   ;;  %s340_s7 = sphi %s359_s7, %s444_s7   ;;  %s336_s6 = sphi %s357_s6, %s443_s6  }
   0x3   : > { %p19_p0 = scmp.ge.s32.totalorder %s18_s10, 2  ;;  %p202_p1 = scmp.ge.s32.totalorder %s344_s8, 1 }
   0x4   : > { %p203_p2 = scmp.eq.s32.totalorder %s169_s9, 0  ;;  %s346_s11 = smov [#allocation3]  }
   0x5   : > { %s446_s10 = smov (%p19_p0, %s18_s10), 0  ;;  %s58_s12 = sshll.u32 %s346_s11, 4  ;;  %s375_s12 = int_to_ptr.vmem [resolvable:$true] %s58_s12 }
   0x6   : > { %p379_p3 = pnand %p203_p2, %p202_p1  ;;  %s242_s14 = scalar_lea.vmem %s375_s12, 32 }
   0x7   : > { %p243_p5 = scmp.ne.s32.totalorder %s375_s12, %s242_s14  ;;  %p250_p8 = scmp.lt.s32.totalorder %s375_s12, %s375_s12 }
   0x8   : > { %p192_p4 = pneg %p379_p3  ;;  %p251_p9 = scmp.lt.s32.totalorder %s242_s14, %s242_s14 }
   0xa   : > { %p245_p6 = pnand %p243_p5, %p192_p4  ;;  %p252_p10 = por %p251_p9, %p250_p8 }
   0xc   : > { %p246_p7 = pneg %p245_p6 }
   0xe   : > { %p253_p11 = pnand %p252_p10, %p246_p7 }
  0x10   : > { %256 = shalt.err (!%p253_p11)
}
  0x11   : > { %193 = dma.hbm_to_vmem [thread:$0]  (!%p379_p3), %s440_s0, 32, %s375_s12, [#allocation4]  }
  0x12   : > { %323 = dma.done.wait (%p192_p4), [#allocation4], 32  }
  0x13   : > { %325 = vsyncadd (%p192_p4), [#allocation4], 4294967264  ;;  %s183_s17 = sshll.u32 %s336_s6, 6  ;;  %p259_p12 = pnand %p243_p5, %p202_p1 }
  0x14   : > { %s82_s20 = scalar_lea.hbm %s441_s1, %s183_s17 }
  0x15   : > { %p260_p13 = pneg %p259_p12 }
  0x17   : > { %p267_p0 = pnand %p260_p13, %p252_p10 }
  0x19   : > { %270 = shalt.err (!%p267_p0)  }
  0x1a   : > { %s271_s21 = scalar_lea.hbm %s82_s20, 32  ;;  %s275_s24 = scalar_lea.hbm %s441_s1, 128 }
  0x1b   : > { %p272_p2 = scmp.ne.s32.totalorder %s82_s20, %s271_s21  ;;  %p276_p4 = scmp.lt.s32.totalorder %s82_s20, %s441_s1 }
  0x1c   : > { %p277_p7 = scmp.lt.s32.totalorder %s275_s24, %s271_s21 }
  0x1d   : > { %p273_p3 = pnand %p272_p2, %p202_p1 }
  0x1e   : > { %p278_p8 = por %p277_p7, %p276_p4 }
  0x1f   : > { %p274_p6 = pneg %p273_p3 }
  0x21   : > { %p279_p5 = pnand %p278_p8, %p274_p6 }
  0x23   : > { %282 = shalt.err (!%p279_p5)  }
  0x24   : > { %198 = dma.vmem_to_hbm [thread:$0]  (%p202_p1), %s375_s12, 32, %s82_s20, [#allocation2] }
  0x25   : > { %296 = shalt.err (!%p267_p0)  }
  0x26   : > { %s309_s27 = scalar_lea.hbm %s82_s20, 64  ;;  %p302_p12 = scmp.lt.s32.totalorder %s271_s21, %s441_s1 }
  0x27   : > { %p298_p9 = scmp.ne.s32.totalorder %s271_s21, %s309_s27  ;;  %p303_p13 = scmp.lt.s32.totalorder %s275_s24, %s309_s27 }
  0x29   : > { %p299_p10 = pnand %p298_p9, %p202_p1  ;;  %p304_p2 = por %p303_p13, %p302_p12 }
  0x2b   : > { %p300_p11 = pneg %p299_p10 }
  0x2d   : > { %p305_p3 = pnand %p304_p2, %p300_p11 }
  0x2f   : > { %308 = shalt.err (!%p305_p3)  }
  0x30   : > { %199 = dma.vmem_to_hbm [thread:$0]  (%p202_p1), %s375_s12, 32, %s271_s21, [#allocation2 + $0x1] }
  0x31   : > { %327 = dma.done.wait (%p202_p1), [#allocation2], 32 }
  0x32   : > { %329 = vsyncadd (%p202_p1), [#allocation2], 4294967264 }
  0x33   : > { %331 = dma.done.wait (%p202_p1), [#allocation2 + $0x1], 32 }
  0x34   : > { %333 = vsyncadd (%p202_p1), [#allocation2 + $0x1], 4294967264  ;;  %s12_s8 = sadd.s32 1, %s344_s8   ;;  %s443_s6 = smov %s340_s7 }
  0x35   : > { %p9_p0 = scmp.ge.s32.totalorder %s12_s8, 3   ;;  %s444_s7 = smov %s446_s10 }
  0x37   :  { %11 = sbr.rel (!%p9_p0) target bundleno = 2 (0x2), region = 53 }
  0x3c   :  { %116 = vsyncpa [#allocation4], 1 }
  0x3d   :  { %118 = vsyncpa [#allocation4 + $0x1], 1 }
  0x3e   :  { %119 = vsyncmov [#allocation2] }
  0x41   :  { %s120_s30 = vpop.sfrf %119 }
  0x42   :  { %p181_p6 = scmp.ne.s32.totalorder %s120_s30, 0 }
  0x44   :  { %124 = shalt.err (%p181_p6)  }
  0x45   :  { %126 = vsyncmov [#allocation2 + $0x1] }
  0x48   :  { %s127_s2 = vpop.sfrf %126 }
  0x49   :  { %p182_p1 = scmp.ne.s32.totalorder %s127_s2, 0 }
  0x4b   :  { %131 = shalt.err (%p182_p1)  }

</bundles_post_ra>
